<compile_context>
chip_gen: v7x
topology: tpu7x:2x2x1
jax: 0.10.0
libtpu: 0.0.40
codegen_flags: <defaults>
</compile_context>

<pallas_src>
import jax
import jax.numpy as jnp
from jax.experimental import pallas as pl
from jax.experimental.pallas import tpu as pltpu

NUM_CLASSES = 2
LANES = 128          # vreg lane width
ROW_ALIGN = 32       # keeps both f32 (8,128) and int8 (32,128) native tiles aligned

# Below this element count the pallas_call launch overhead dwarfs the work;
# let XLA fuse the reference instead.
_PALLAS_MIN_ELEMS = 8 * 1024


def margin_loss_kernel(pred_ref, mask_ref, out_ref):
    """One (tile_rows, 128) tile -> (8, 128) partial sum of the margin loss."""
    p = pred_ref[...].astype(jnp.float32)          # (TR, 128) f32
    m = mask_ref[...]                              # (TR, 128) int8 one-hot mask

    left = jnp.maximum(0.9 - p, 0.0)
    right = jnp.maximum(p - 0.1, 0.0)
    # where(mask, left^2, 0.5*right^2)  ==  onehot*left^2 + 0.5*(1-onehot)*right^2
    loss = jnp.where(m != 0, left * left, 0.5 * (right * right))

    tr = loss.shape[0]
    # Blocked (vreg-shaped) partial sum: groups of 8 rows added elementwise on
    # the VPU; no cross-lane/XLU reduction inside the kernel.
    out_ref[...] = jnp.sum(loss.reshape(tr // 8, 8, LANES), axis=0)


def margin_loss_pallas(pred, labels, *, tile_rows=1024):
    """pred: (B, 2) float, labels: (B,) int -> scalar float32 (always uses Pallas)."""
    B, C = pred.shape
    assert C == NUM_CLASSES
    assert tile_rows % ROW_ALIGN == 0 and tile_rows >= ROW_ALIGN
    total = B * C

    # One-hot mask as int8 (out-of-range labels -> all-zero row, like the ref).
    onehot = (
        labels.astype(jnp.int32)[:, None] == jnp.arange(C, dtype=jnp.int32)[None, :]
    ).astype(jnp.int8)                              # (B, C)

    # Flatten row-major into a lane-dense slab and pad the ragged tail.
    rows = pl.cdiv(total, LANES)
    rows = ((rows + ROW_ALIGN - 1) // ROW_ALIGN) * ROW_ALIGN
    tile_rows = min(tile_rows, rows)                # both multiples of ROW_ALIGN
    num_tiles = pl.cdiv(rows, tile_rows)
    rows_padded = num_tiles * tile_rows
    pad = rows_padded * LANES - total

    # pred padded with 0.0 and mask with 0 => padded loss contribution is 0.
    pred2d = jnp.pad(pred.reshape(-1), (0, pad)).reshape(rows_padded, LANES)
    mask2d = jnp.pad(onehot.reshape(-1), (0, pad)).reshape(rows_padded, LANES)

    partials = pl.pallas_call(
        margin_loss_kernel,
        out_shape=jax.ShapeDtypeStruct((num_tiles * 8, LANES), jnp.float32),
        grid=(num_tiles,),
        in_specs=[
            pl.BlockSpec((tile_rows, LANES), lambda i: (i, 0)),
            pl.BlockSpec((tile_rows, LANES), lambda i: (i, 0)),
        ],
        out_specs=pl.BlockSpec((8, LANES), lambda i: (i, 0)),
        compiler_params=pltpu.CompilerParams(
            dimension_semantics=("parallel",),      # lets v7x shard tiles over both TCs
        ),
    )(pred2d, mask2d)

    # Tiny final cross-lane reduce + mean over the TRUE element count.
    return jnp.sum(partials) / jnp.float32(total)


def margin_loss(pred, labels, *, tile_rows=1024):
    """Dispatcher: tiny problems go straight to fused XLA, large ones to Pallas."""
    if pred.shape[0] * pred.shape[1] < _PALLAS_MIN_ELEMS:
        return margin_loss_ref(pred, labels)
    return margin_loss_pallas(pred, labels, tile_rows=tile_rows)


def margin_loss_ref(pred, labels):
    onehot = jax.nn.one_hot(labels, NUM_CLASSES, dtype=jnp.float32)
    p = pred.astype(jnp.float32)
    left = jnp.maximum(0.9 - p, 0.0) ** 2
    right = jnp.maximum(p - 0.1, 0.0) ** 2
    return jnp.mean(onehot * left + 0.5 * (1.0 - onehot) * right)


if __name__ == "__main__":
    key = jax.random.PRNGKey(0)
    k1, k2, k3, k4 = jax.random.split(key, 4)

    # Small shape consistent with the module (binary-classification logits).
    B = 8
    pred = jax.random.uniform(k1, (B, NUM_CLASSES), dtype=jnp.float32)
    labels = jax.random.randint(k2, (B,), 0, NUM_CLASSES, dtype=jnp.int32)

    loss = margin_loss_pallas(pred, labels)         # exercise the kernel itself
    jax.block_until_ready(loss)
    ref = margin_loss_ref(pred, labels)
    assert jnp.allclose(loss, ref, atol=1e-6, rtol=1e-5), (loss, ref)

    # Multi-tile grid + ragged-tail path (small tile_rows to force several tiles).
    B2 = 3000
    pred2 = jax.random.uniform(k3, (B2, NUM_CLASSES), dtype=jnp.float32)
    labels2 = jax.random.randint(k4, (B2,), 0, NUM_CLASSES, dtype=jnp.int32)

    loss2 = margin_loss_pallas(pred2, labels2, tile_rows=32)
    jax.block_until_ready(loss2)
    ref2 = margin_loss_ref(pred2, labels2)
    assert jnp.allclose(loss2, ref2, atol=1e-6, rtol=1e-5), (loss2, ref2)

    print("KERNEL_OK")
</pallas_src>

<mosaic_0001>
module attributes {stable_mosaic.version = 11 : i64} {
  func.func @margin_loss_kernel(%arg0: i32, %arg1: memref<32x128xf32, #tpu.memory_space<vmem>>, %arg2: memref<32x128xi8, #tpu.memory_space<vmem>>, %arg3: memref<8x128xf32, #tpu.memory_space<vmem>>) attributes {dimension_semantics = [#tpu.dimension_semantics<parallel>], iteration_bounds = array<i64: 1>, scalar_prefetch = 0 : i64, scratch_operands = 0 : i64, tpu.core_type = #tpu.core_type<tc>, window_params = [{transform_indices = @transform_0, window_bounds = array<i64: 32, 128>}, {transform_indices = @transform_1, window_bounds = array<i64: 32, 128>}, {transform_indices = @transform_2, window_bounds = array<i64: 8, 128>}]} {
    %c0 = arith.constant 0 : index
    %c0_0 = arith.constant 0 : index
    %0 = vector.load %arg1[%c0, %c0_0] : memref<32x128xf32, #tpu.memory_space<vmem>>, vector<32x128xf32>
    %c0_1 = arith.constant 0 : index
    %c0_2 = arith.constant 0 : index
    %1 = vector.load %arg2[%c0_1, %c0_2] : memref<32x128xi8, #tpu.memory_space<vmem>>, vector<32x128xi8>
    %cst = arith.constant 0.899999976 : f32
    %2 = vector.broadcast %cst : f32 to vector<32x128xf32>
    %3 = arith.subf %2, %0 : vector<32x128xf32>
    %cst_3 = arith.constant 0.000000e+00 : f32
    %4 = vector.broadcast %cst_3 : f32 to vector<32x128xf32>
    %5 = arith.maximumf %3, %4 : vector<32x128xf32>
    %cst_4 = arith.constant 1.000000e-01 : f32
    %6 = vector.broadcast %cst_4 : f32 to vector<32x128xf32>
    %7 = arith.subf %0, %6 : vector<32x128xf32>
    %cst_5 = arith.constant 0.000000e+00 : f32
    %8 = vector.broadcast %cst_5 : f32 to vector<32x128xf32>
    %9 = arith.maximumf %7, %8 : vector<32x128xf32>
    %c0_i8 = arith.constant 0 : i8
    %10 = vector.broadcast %c0_i8 : i8 to vector<32x128xi8>
    %11 = arith.cmpi ne, %1, %10 : vector<32x128xi8>
    %12 = arith.mulf %5, %5 : vector<32x128xf32>
    %13 = arith.mulf %9, %9 : vector<32x128xf32>
    %cst_6 = arith.constant 5.000000e-01 : f32
    %14 = vector.broadcast %cst_6 : f32 to vector<32x128xf32>
    %15 = arith.mulf %14, %13 : vector<32x128xf32>
    %16 = arith.select %11, %12, %15 : vector<32x128xi1>, vector<32x128xf32>
    %17 = vector.shape_cast %16 : vector<32x128xf32> to vector<4x8x128xf32>
    %cst_7 = arith.constant dense<0.000000e+00> : vector<8x128xf32>
    %18 = vector.multi_reduction <add>, %17, %cst_7 [0] : vector<4x8x128xf32> to vector<8x128xf32>
    %c0_8 = arith.constant 0 : index
    %c0_9 = arith.constant 0 : index
    %19 = vector.load %arg3[%c0_8, %c0_9] : memref<8x128xf32, #tpu.memory_space<vmem>>, vector<8x128xf32>
    tpu.vector_store %arg3[%c0_8, %c0_9], %18 {strides = array<i32>} : memref<8x128xf32, #tpu.memory_space<vmem>>, vector<8x128xf32>,
    return
  }
  func.func @transform_0(%arg0: i32) -> (i32, i32) {
    %c0_i32 = arith.constant 0 : i32
    %c0_i32_0 = arith.constant 0 : i32
    return %arg0, %c0_i32 : i32, i32
  }
  func.func @transform_1(%arg0: i32) -> (i32, i32) {
    %c0_i32 = arith.constant 0 : i32
    %c0_i32_0 = arith.constant 0 : i32
    return %arg0, %c0_i32 : i32, i32
  }
  func.func @transform_2(%arg0: i32) -> (i32, i32) {
    %c0_i32 = arith.constant 0 : i32
    %c0_i32_0 = arith.constant 0 : i32
    return %arg0, %c0_i32 : i32, i32
  }
}

</mosaic_0001>

<bundles_post_ra>
// kernel: tpu_custom_call.1
= control target key start
LH: loop header
LB: loop body
LE: loop exit
PB: predicated region body
PF: predicated region fallthrough
CT: control target
= control target key end

     0   :  { %7 = vsyncpa [#allocation3], 0  ;;  %s266_s0 = inlined_call_operand.hbm [shape: f32[32,128], index: 0, kind: input, shape index: {}]   ;;  %s267_s1 = inlined_call_operand.hbm [shape: s8[32,128], index: 1, kind: input, shape index: {}]   ;;  %s268_s2 = inlined_call_operand.hbm [shape: f32[8,128], index: 2, kind: output, shape index: {}]  }
   0x1   :  { %8 = vsyncpa [#allocation6], 0 }
   0x2   :  { %9 = vsyncpa [#allocation4], 0  ;;  %s209_s9 = smov [#allocation2]   ;;  %s137_s13 = scalar_lea.hbm %s266_s0, 512 }
   0x3   :  { %s15_s10 = sshll.u32 %s209_s9, 4  ;;  %p138_p0 = scmp.ne.s32.totalorder %s266_s0, %s137_s13  ;;  %s16_s10 = int_to_ptr.vmem [resolvable:$true] %s15_s10 }
   0x4   :  { %p141_p1 = scmp.lt.u32.totalorder %s137_s13, %s266_s0 }
   0x6   :  { %p143_p2 = pnand %p141_p1, %p138_p0 }
   0x8   :  { %146 = shalt.err (!%p143_p2)
}
   0x9   :  { %s147_s18 = scalar_lea.vmem %s16_s10, 512  ;;  %p152_p4 = scmp.lt.s32.totalorder %s16_s10, %s16_s10 }
   0xa   :  { %p148_p3 = scmp.ne.s32.totalorder %s16_s10, %s147_s18  ;;  %p153_p5 = scmp.lt.s32.totalorder %s147_s18, %s147_s18 }
   0xc   :  { %p154_p6 = por %p153_p5, %p152_p4 }
   0xe   :  { %p155_p7 = pnand %p154_p6, %p148_p3 }
  0x10   :  { %158 = shalt.err (!%p155_p7)
}
  0x11   :  { %s210_s19 = smov 128   ;;  %s211_s20 = smov 8  }
  0x12   :  { %21 = dma.hbm_to_vmem [thread:$0]  %s266_s0, 512, %s16_s10, [#allocation3], %s210_s19, %s210_s19, %s211_s20  }
  0x13   :  { %s212_s23 = smov [#allocation5]   ;;  %s159_s27 = scalar_lea.hbm %s267_s1, 128 }
  0x14   :  { %s28_s24 = sshll.u32 %s212_s23, 4  ;;  %p160_p8 = scmp.ne.s32.totalorder %s267_s1, %s159_s27  ;;  %s29_s24 = int_to_ptr.vmem [resolvable:$true] %s28_s24 }
  0x15   :  { %p163_p9 = scmp.lt.u32.totalorder %s159_s27, %s267_s1 }
  0x17   :  { %p165_p10 = pnand %p163_p9, %p160_p8 }
  0x19   :  { %168 = shalt.err (!%p165_p10)
}
  0x1a   :  { %s169_s4 = scalar_lea.vmem %s29_s24, 128  ;;  %p174_p12 = scmp.lt.s32.totalorder %s29_s24, %s29_s24 }
  0x1b   :  { %p170_p11 = scmp.ne.s32.totalorder %s29_s24, %s169_s4  ;;  %p175_p13 = scmp.lt.s32.totalorder %s169_s4, %s169_s4 }
  0x1d   :  { %p176_p0 = por %p175_p13, %p174_p12 }
  0x1f   :  { %p177_p1 = pnand %p176_p0, %p170_p11 }
  0x21   :  { %180 = shalt.err (!%p177_p1)
}
  0x22   :  { %31 = dma.hbm_to_vmem [thread:$0]  %s267_s1, 128, %s29_s24, [#allocation6]  }
  0x23   :  { %203 = dma.done.wait [#allocation3], 512  }
  0x24   :  { %204 = vsyncadd [#allocation3], 4294966784 }
  0x25   :  { %205 = dma.done.wait [#allocation6], 128  }
  0x26   :  { %206 = vsyncadd [#allocation6], 4294967168  ;;  %v40_v0 = vld [vmem:[#allocation2] sm:$0xff]  ;;  %v41_v1 = vld [vmem:[#allocation2 + $0x8] sm:$0xff]  ;;  %v213_v17 = vmov 0   ;;  %s214_s1 = smov [#allocation7]  }
  0x27   :  { %v42_v2 = vld [vmem:[#allocation2 + $0x10] sm:$0xff]  ;;  %v44_v3 = vld [vmem:[#allocation5] sm:$0xff]  ;;  %v43_v4 = vld [vmem:[#allocation2 + $0x18] sm:$0xff]  ;;  %v127_v5 = vadd.f32 -0.1, %v40_v0  ;;  %s117_s6 = sshll.u32 %s214_s1, 4  ;;  %s118_s6 = int_to_ptr.vmem [resolvable:$true] %s117_s6 }
  0x28   :  { %v45_v6 = vsub.f32 0.9, %v40_v0  ;;  %v128_v7 = vadd.f32 -0.1, %v41_v1  ;;  %v129_v8 = vadd.f32 -0.1, %v42_v2  ;;  %vm61_vm0 = vnez %v44_v3  ;;  %p186_p3 = scmp.lt.s32.totalorder %s118_s6, %s118_s6 }
  0x29   :  { %v46_v9 = vsub.f32 0.9, %v41_v1  ;;  %v47_v10 = vsub.f32 0.9, %v42_v2  ;;  %v130_v11 = vadd.f32 -0.1, %v43_v4 }
  0x2a   :  { %v57_v12 = vmax.f32 %v127_v5, 0.0  ;;  %v58_v13 = vmax.f32 %v128_v7, 0.0  ;;  %v59_v14 = vmax.f32 %v129_v8, 0.0  ;;  %v48_v15 = vsub.f32 0.9, %v43_v4  ;;  %s181_s7 = scalar_lea.vmem %s118_s6, 128 }
  0x2b   :  { %v49_v16 = vmax.f32 %v45_v6, 0.0  ;;  %v74_v18 = vsel %vm61_vm0, 16843009, %v213_v17  ;;  %v50_v19 = vmax.f32 %v46_v9, 0.0  ;;  %v51_v20 = vmax.f32 %v47_v10, 0.0  ;;  %p182_p2 = scmp.ne.s32.totalorder %s118_s6, %s181_s7  ;;  %p187_p4 = scmp.lt.s32.totalorder %s181_s7, %s181_s7 }
  0x2c   :  { %v75_v21 = vunpack.c.0.s8 %v74_v18  ;;  %v76_v22 = vunpack.c.1.s8 %v74_v18  ;;  %v60_v23 = vmax.f32 %v130_v11, 0.0  ;;  %v66_v24 = vmul.f32 %v57_v12, %v57_v12 }
  0x2d   :  { %v77_v25 = vunpack.c.2.s8 %v74_v18  ;;  %v78_v26 = vunpack.c.3.s8 %v74_v18  ;;  %v67_v27 = vmul.f32 %v58_v13, %v58_v13  ;;  %v68_v28 = vmul.f32 %v59_v14, %v59_v14  ;;  %p188_p5 = por %p187_p4, %p186_p3 }
  0x2e   :  { %v79_v29 = vpack.c.b16 %v75_v21, %v75_v21  ;;  %v81_v30 = vpack.c.b16 %v76_v22, %v76_v22  ;;  %v52_v31 = vmax.f32 %v48_v15, 0.0  ;;  %v62_v32 = vmul.f32 %v49_v16, %v49_v16 }
  0x2f   :  { %v83_v33 = vpack.c.b16 %v77_v25, %v77_v25  ;;  %v85_v34 = vpack.c.b16 %v78_v26, %v78_v26  ;;  %v63_v35 = vmul.f32 %v50_v19, %v50_v19  ;;  %v64_v36 = vmul.f32 %v51_v20, %v51_v20  ;;  %p189_p6 = pnand %p188_p5, %p182_p2 }
  0x30   :  { %v80_v37 = vpack.c.b8 %v79_v29, %v79_v29  ;;  %v82_v38 = vpack.c.b8 %v81_v30, %v81_v30  ;;  %v69_v39 = vmul.f32 %v60_v23, %v60_v23  ;;  %v70_v40 = vmul.f32 0.5, %v66_v24 }
  0x31   :  { %v84_v41 = vpack.c.b8 %v83_v33, %v83_v33  ;;  %v86_v42 = vpack.c.b8 %v85_v34, %v85_v34  ;;  %v71_v43 = vmul.f32 0.5, %v67_v27  ;;  %v72_v44 = vmul.f32 0.5, %v68_v28 }
  0x32   :  { %vm87_vm1 = vnez %v80_v37  ;;  %vm88_vm2 = vnez %v82_v38  ;;  %v65_v51 = vmul.f32 %v52_v31, %v52_v31  ;;  %v73_v52 = vmul.f32 0.5, %v69_v39 }
  0x33   :  { %vm89_vm3 = vnez %v84_v41  ;;  %vm90_vm4 = vnez %v86_v42  ;;  %v91_v45 = vsel %vm87_vm1, 16843009, %v213_v17  ;;  %v92_v46 = vsel %vm88_vm2, 16843009, %v213_v17 }
  0x34   :  { %v93_v47 = vsel %vm89_vm3, 16843009, %v213_v17  ;;  %v94_v48 = vsel %vm90_vm4, 16843009, %v213_v17  ;;  %v95_v49 = vunpack.c.0.s8 %v91_v45  ;;  %v96_v50 = vunpack.c.0.s8 %v92_v46 }
  0x35   :  { %v97_v53 = vunpack.c.0.s8 %v93_v47  ;;  %v98_v54 = vunpack.c.0.s8 %v94_v48 }
  0x36   :  { %vm99_vm5 = vcmp.ne.s32.totalorder %v95_v49, 0  ;;  %vm100_vm6 = vcmp.ne.s32.totalorder %v96_v50, 0 }
  0x37   :  { %vm101_vm7 = vcmp.ne.s32.totalorder %v97_v53, 0  ;;  %vm102_vm8 = vcmp.ne.s32.totalorder %v98_v54, 0  ;;  %v103_v55 = vsel %vm99_vm5, %v62_v32, %v70_v40  ;;  %v104_v56 = vsel %vm100_vm6, %v63_v35, %v71_v43 }
  0x38   :  { %v105_v57 = vsel %vm101_vm7, %v64_v36, %v72_v44  ;;  %v107_v58 = vadd.f32 %v104_v56, %v103_v55  ;;  %v106_v59 = vsel %vm102_vm8, %v65_v51, %v73_v52 }
  0x3a   :  { %v108_v60 = vadd.f32 %v107_v58, %v105_v57 }
  0x3c   :  { %v109_v61 = vadd.f32 %v108_v60, %v106_v59 }
  0x3e   :  { %110 = vst [vmem:[#allocation7] sm:$0xff] %v109_v61 }
  0x3f   :  { %192 = shalt.err (!%p189_p6)
}
  0x40   :  { %s193_s10 = scalar_lea.hbm %s268_s2, 128 }
  0x41   :  { %p194_p7 = scmp.ne.s32.totalorder %s268_s2, %s193_s10  ;;  %p197_p8 = scmp.lt.u32.totalorder %s193_s10, %s268_s2 }
  0x43   :  { %p199_p9 = pnand %p197_p8, %p194_p7 }
  0x45   :  { %202 = shalt.err (!%p199_p9)
}
  0x46   :  { %120 = dma.vmem_to_hbm [thread:$0]  %s118_s6, 128, %s268_s2, [#allocation4]  }
  0x47   :  { %207 = dma.done.wait [#allocation4], 128  }
  0x48   :  { %208 = vsyncadd [#allocation4], 4294967168 }
  0x49   :  { %124 = vsyncpa [#allocation3], 1 }
  0x4a   :  { %125 = vsyncpa [#allocation6], 1 }
  0x4b   :  { %126 = vsyncpa [#allocation4], 1 }

</bundles_post_ra>
